<compile_context>
chip_gen: v6e
topology: v6e:2x2x1
jax: 0.10.0
libtpu: 0.0.40
codegen_flags: <defaults>
</compile_context>

<pallas_src>
import functools

import jax
import jax.numpy as jnp
from jax.experimental import pallas as pl
from jax.experimental.pallas import tpu as pltpu

LANE = 128


def _round_up(x, m):
    return (x + m - 1) // m * m


# ------------------------------ kernel ------------------------------
def _temporal_block_kernel(x_ref, w1_ref, b1_ref, w2_ref, b2_ref, *rest,
                           K, dilation, TL, pad, pad_al, has_downsample):
    """One time-tile of one batch element of a TemporalBlock.

    x_ref : (1, TL, Cin_p)   f32   current time tile (lane-padded channels)
    w1_ref: (K*Cin_p, Cout_p) bf16  conv1 taps fused along the contraction dim
    b1_ref: (1, Cout_p)      f32
    w2_ref: (K*Cout_p, Cout_p) bf16
    b2_ref: (1, Cout_p)      f32
    [wd_ref: (Cin_p, Cout_p) bf16, bd_ref: (1, Cout_p) f32]   only if downsample
    o_ref : (1, TL, Cout_p)  f32
    x_stage: VMEM (pad_al+TL, Cin_p)  bf16 -- rows [pad_al-pad, pad_al) carry the
             causal left context of x across time tiles.
    h_stage: VMEM (pad_al+TL, Cout_p) bf16 -- same for the conv1 output.
    """
    if has_downsample:
        wd_ref, bd_ref, o_ref, x_stage, h_stage = rest
    else:
        wd_ref = bd_ref = None
        o_ref, x_stage, h_stage = rest

    t = pl.program_id(1)
    off = pad_al - pad          # sublane-aligned origin of the causal context window

    if pad > 0:
        @pl.when(t == 0)
        def _():
            # zero the causal left context at the start of every sequence
            x_stage[0:pad_al, :] = jnp.zeros((pad_al, x_stage.shape[1]), jnp.bfloat16)
            h_stage[0:pad_al, :] = jnp.zeros((pad_al, h_stage.shape[1]), jnp.bfloat16)

    x_f32 = x_ref[0]                                     # (TL, Cin_p) f32
    x_stage[pad_al:pad_al + TL, :] = x_f32.astype(jnp.bfloat16)

    # ---- conv1: K dilated taps fused into a single MXU matmul, + bias + relu ----
    lhs1 = jnp.concatenate(
        [x_stage[off + k * dilation: off + k * dilation + TL, :] for k in range(K)],
        axis=1)                                          # (TL, K*Cin_p) bf16
    h = jnp.dot(lhs1, w1_ref[...], preferred_element_type=jnp.float32)
    h = jnp.maximum(h + b1_ref[...], 0.0)                # relu1; dropout = identity

    h_stage[pad_al:pad_al + TL, :] = h.astype(jnp.bfloat16)

    # ---- conv2 ----
    lhs2 = jnp.concatenate(
        [h_stage[off + k * dilation: off + k * dilation + TL, :] for k in range(K)],
        axis=1)                                          # (TL, K*Cout_p) bf16
    out = jnp.dot(lhs2, w2_ref[...], preferred_element_type=jnp.float32)
    out = jnp.maximum(out + b2_ref[...], 0.0)            # relu2; dropout = identity

    # ---- residual (+ optional 1x1 downsample) + final relu ----
    if has_downsample:
        res = jnp.dot(x_f32.astype(jnp.bfloat16), wd_ref[...],
                      preferred_element_type=jnp.float32) + bd_ref[...]
    else:
        res = x_f32                                      # exact f32 identity path
    o_ref[0] = jnp.maximum(out + res, 0.0)

    if pad > 0:
        # carry the last `pad` rows into the causal-context slot for the next tile
        x_carry = x_stage[pad_al + TL - pad: pad_al + TL, :]
        h_carry = h_stage[pad_al + TL - pad: pad_al + TL, :]
        x_stage[off:off + pad, :] = x_carry
        h_stage[off:off + pad, :] = h_carry


# --------------------------- param prep ---------------------------
def _prepare_params(params):
    """Lane-pad channels to 128, fuse the K conv taps, cast MXU operands to bf16."""
    w1, b1, w2, b2, wd, bd = params
    K, c_in, c_out = w1.shape
    cin_p, cout_p = _round_up(c_in, LANE), _round_up(c_out, LANE)

    w1f = jnp.pad(w1, ((0, 0), (0, cin_p - c_in), (0, cout_p - c_out)))
    w1f = w1f.reshape(K * cin_p, cout_p).astype(jnp.bfloat16)
    w2f = jnp.pad(w2, ((0, 0), (0, cout_p - c_out), (0, cout_p - c_out)))
    w2f = w2f.reshape(K * cout_p, cout_p).astype(jnp.bfloat16)
    b1p = jnp.pad(b1, ((0, 0), (0, cout_p - c_out))).astype(jnp.float32)
    b2p = jnp.pad(b2, ((0, 0), (0, cout_p - c_out))).astype(jnp.float32)
    if wd is not None:
        wdp = jnp.pad(wd, ((0, cin_p - c_in), (0, cout_p - c_out))).astype(jnp.bfloat16)
        bdp = jnp.pad(bd, ((0, 0), (0, cout_p - c_out))).astype(jnp.float32)
    else:
        wdp = bdp = None
    return (w1f, b1p, w2f, b2p, wdp, bdp), K, c_in, c_out, cin_p, cout_p


# ------------------------ pallas_call wrapper ------------------------
def _temporal_block_lane_padded(x_lp, prepped, *, kernel_size, dilation, time_tile=512):
    """x_lp: (B, L, Cin_p) lane-padded -> (B, L, Cout_p) lane-padded."""
    w1f, b1p, w2f, b2p, wdp, bdp = prepped
    B, L, cin_p = x_lp.shape
    cout_p = b1p.shape[1]
    K = kernel_size
    pad = (K - 1) * dilation
    pad_al = _round_up(pad, 16)           # aligned causal-context region (bf16 packs 2 rows)

    # time tiling: VMEM footprint is O(TL), independent of L
    TL = L if L <= time_tile else _round_up(time_tile, 8)
    Lp = _round_up(L, TL)
    if Lp != L:
        x_lp = jnp.pad(x_lp, ((0, 0), (0, Lp - L), (0, 0)))
    num_t = Lp // TL

    has_downsample = wdp is not None
    kernel = functools.partial(
        _temporal_block_kernel, K=K, dilation=dilation, TL=TL,
        pad=pad, pad_al=pad_al, has_downsample=has_downsample)

    in_specs = [
        pl.BlockSpec((1, TL, cin_p), lambda b, t: (b, t, 0)),
        pl.BlockSpec((K * cin_p, cout_p), lambda b, t: (0, 0)),
        pl.BlockSpec((1, cout_p), lambda b, t: (0, 0)),
        pl.BlockSpec((K * cout_p, cout_p), lambda b, t: (0, 0)),
        pl.BlockSpec((1, cout_p), lambda b, t: (0, 0)),
    ]
    args = [x_lp, w1f, b1p, w2f, b2p]
    if has_downsample:       # no dummy wd/bd buffers when there is no downsample
        in_specs += [pl.BlockSpec((cin_p, cout_p), lambda b, t: (0, 0)),
                     pl.BlockSpec((1, cout_p), lambda b, t: (0, 0))]
        args += [wdp, bdp]

    out = pl.pallas_call(
        kernel,
        out_shape=jax.ShapeDtypeStruct((B, Lp, cout_p), jnp.float32),
        grid_spec=pltpu.PrefetchScalarGridSpec(
            num_scalar_prefetch=0,
            grid=(B, num_t),
            in_specs=in_specs,
            out_specs=pl.BlockSpec((1, TL, cout_p), lambda b, t: (b, t, 0)),
            scratch_shapes=[pltpu.VMEM((pad_al + TL, cin_p), jnp.bfloat16),
                            pltpu.VMEM((pad_al + TL, cout_p), jnp.bfloat16)]),
        compiler_params=pltpu.CompilerParams(
            # the time axis carries causal state in VMEM -> must stay sequential;
            # megacore parallelism comes from the batch axis.
            dimension_semantics=("parallel", "arbitrary"),
            vmem_limit_bytes=48 * 1024 * 1024),
    )(*args)

    if Lp != L:
        out = out[:, :L, :]
    return out


# --------------------------- public API ---------------------------
def temporal_block(x_blc, params, *, kernel_size, dilation, time_tile=512):
    """One TemporalBlock, channels-last: (B, L, C_in) -> (B, L, C_out)."""
    _, _, c_in = x_blc.shape
    prepped, K, ci, co, cin_p, _ = _prepare_params(params)
    assert ci == c_in and K == kernel_size
    x_lp = jnp.pad(x_blc, ((0, 0), (0, 0), (0, cin_p - c_in)))
    out_lp = _temporal_block_lane_padded(x_lp, prepped, kernel_size=kernel_size,
                                         dilation=dilation, time_tile=time_tile)
    return out_lp[:, :, :co]


def temporal_block_forward(x_ncl, params, *, kernel_size, dilation, time_tile=512):
    """PyTorch-facing TemporalBlock.forward: (B, C_in, L) -> (B, C_out, L)."""
    x = jnp.transpose(x_ncl, (0, 2, 1))
    y = temporal_block(x, params, kernel_size=kernel_size, dilation=dilation,
                       time_tile=time_tile)
    return jnp.transpose(y, (0, 2, 1))


def temporal_conv_net(x_ncl, layer_params, *, kernel_size, time_tile=512):
    """Stack of TemporalBlocks (dilation 2**i), PyTorch layout (B, C, L)."""
    # TODO(synk): fuse consecutive blocks into one pallas_call so inter-layer
    # activations stay in VMEM instead of round-tripping through HBM.
    x = jnp.transpose(x_ncl, (0, 2, 1))                    # (B, L, C)
    _, _, c_in = x.shape
    x = jnp.pad(x, ((0, 0), (0, 0), (0, _round_up(c_in, LANE) - c_in)))
    c_out = c_in
    for i, params in enumerate(layer_params):
        prepped, _, _, co, _, _ = _prepare_params(params)
        x = _temporal_block_lane_padded(x, prepped, kernel_size=kernel_size,
                                        dilation=2 ** i, time_tile=time_tile)
        c_out = co
    return jnp.transpose(x[:, :, :c_out], (0, 2, 1))       # back to (B, C, L)


# ------------------------- pure-JAX reference -------------------------
def _ref_block(x_blc, params, kernel_size, dilation):
    w1, b1, w2, b2, wd, bd = params
    B, L, _ = x_blc.shape
    pad = (kernel_size - 1) * dilation

    def causal_conv(inp, w, b):
        ip = jnp.pad(inp, ((0, 0), (pad, 0), (0, 0)))
        acc = jnp.zeros((B, L, w.shape[2]), jnp.float32)
        for k in range(kernel_size):
            acc = acc + jnp.einsum('blc,co->blo',
                                   ip[:, k * dilation:k * dilation + L, :], w[k])
        return acc + b

    h = jax.nn.relu(causal_conv(x_blc, w1, b1))
    out = jax.nn.relu(causal_conv(h, w2, b2))
    res = x_blc if wd is None else jnp.einsum('blc,co->blo', x_blc, wd) + bd
    return jax.nn.relu(out + res)


def _ref_net(x_ncl, layer_params, kernel_size):
    x = jnp.transpose(x_ncl, (0, 2, 1))
    for i, params in enumerate(layer_params):
        x = _ref_block(x, params, kernel_size, 2 ** i)
    return jnp.transpose(x, (0, 2, 1))


# ------------------------- deterministic init -------------------------
def init_block_params(key, in_ch, out_ch, kernel_size):
    k1, k2, k3, k4, k5, k6 = jax.random.split(key, 6)
    w1 = 0.01 * jax.random.normal(k1, (kernel_size, in_ch, out_ch), jnp.float32)
    b1 = 0.01 * jax.random.normal(k2, (1, out_ch), jnp.float32)
    w2 = 0.01 * jax.random.normal(k3, (kernel_size, out_ch, out_ch), jnp.float32)
    b2 = 0.01 * jax.random.normal(k4, (1, out_ch), jnp.float32)
    if in_ch != out_ch:   # downsample 1x1 conv only when channel counts differ
        wd = 0.01 * jax.random.normal(k5, (in_ch, out_ch), jnp.float32)
        bd = 0.01 * jax.random.normal(k6, (1, out_ch), jnp.float32)
    else:
        wd, bd = None, None
    return (w1, b1, w2, b2, wd, bd)


def init_params(key, num_inputs, num_channels, kernel_size):
    params = []
    for i, out_ch in enumerate(num_channels):
        in_ch = num_inputs if i == 0 else num_channels[i - 1]
        key, sub = jax.random.split(key)
        params.append(init_block_params(sub, in_ch, out_ch, kernel_size))
    return params


if __name__ == "__main__":
    key = jax.random.PRNGKey(0)
    k_x1, k_p1, k_x2, k_p2 = jax.random.split(key, 4)

    # (1) single TemporalBlock, module-like channel counts (24 -> 1), dilation 2.
    B, C_in, L = 2, 24, 16
    kernel_size, dilation = 2, 2
    x1 = jax.random.normal(k_x1, (B, C_in, L), jnp.float32)          # (B, C, L)
    blk_params = init_block_params(k_p1, C_in, 1, kernel_size)
    out1 = jax.block_until_ready(
        temporal_block_forward(x1, blk_params, kernel_size=kernel_size,
                               dilation=dilation))
    ref1 = jnp.transpose(_ref_block(jnp.transpose(x1, (0, 2, 1)), blk_params,
                                    kernel_size, dilation), (0, 2, 1))
    assert out1.shape == (B, 1, L), out1.shape
    assert jnp.allclose(out1, ref1, atol=2e-3, rtol=2e-2), "block mismatch vs reference"

    # (2) two-level TCN stack; time_tile=8 forces 2 time tiles per sequence to
    #     exercise the cross-tile causal carry (and the identity-residual path).
    B2, C2, L2 = 2, 4, 16
    num_channels = [8, 8]
    x2 = jax.random.normal(k_x2, (B2, C2, L2), jnp.float32)
    layer_params = init_params(k_p2, C2, num_channels, kernel_size)
    out2 = jax.block_until_ready(
        temporal_conv_net(x2, layer_params, kernel_size=kernel_size, time_tile=8))
    ref2 = _ref_net(x2, layer_params, kernel_size)
    assert out2.shape == (B2, num_channels[-1], L2), out2.shape
    assert jnp.allclose(out2, ref2, atol=2e-3, rtol=2e-2), "net mismatch vs reference"

    print("KERNEL_OK")
</pallas_src>

<mosaic_0001>
module attributes {stable_mosaic.version = 11 : i64} {
  func.func @_temporal_block_kernel(%arg0: i32, %arg1: i32, %arg2: memref<1x16x128xf32, #tpu.memory_space<vmem>>, %arg3: memref<256x128xbf16, #tpu.memory_space<vmem>>, %arg4: memref<1x128xf32, #tpu.memory_space<vmem>>, %arg5: memref<256x128xbf16, #tpu.memory_space<vmem>>, %arg6: memref<1x128xf32, #tpu.memory_space<vmem>>, %arg7: memref<128x128xbf16, #tpu.memory_space<vmem>>, %arg8: memref<1x128xf32, #tpu.memory_space<vmem>>, %arg9: memref<1x16x128xf32, #tpu.memory_space<vmem>>, %arg10: memref<32x128xbf16, #tpu.memory_space<vmem>>, %arg11: memref<32x128xbf16, #tpu.memory_space<vmem>>) attributes {dimension_semantics = [#tpu.dimension_semantics<parallel>, #tpu.dimension_semantics<arbitrary>], iteration_bounds = array<i64: 2, 1>, scalar_prefetch = 0 : i64, scratch_operands = 2 : i64, tpu.core_type = #tpu.core_type<tc>, window_params = [{transform_indices = @transform_0, window_bounds = array<i64: 1, 16, 128>}, {pipeline_mode = #tpu.pipeline_mode<synchronous>, transform_indices = @transform_1, window_bounds = array<i64: 256, 128>}, {pipeline_mode = #tpu.pipeline_mode<synchronous>, transform_indices = @transform_2, window_bounds = array<i64: 1, 128>}, {pipeline_mode = #tpu.pipeline_mode<synchronous>, transform_indices = @transform_3, window_bounds = array<i64: 256, 128>}, {pipeline_mode = #tpu.pipeline_mode<synchronous>, transform_indices = @transform_4, window_bounds = array<i64: 1, 128>}, {pipeline_mode = #tpu.pipeline_mode<synchronous>, transform_indices = @transform_5, window_bounds = array<i64: 128, 128>}, {pipeline_mode = #tpu.pipeline_mode<synchronous>, transform_indices = @transform_6, window_bounds = array<i64: 1, 128>}, {transform_indices = @transform_7, window_bounds = array<i64: 1, 16, 128>}]} {
    %c0_i32 = arith.constant 0 : i32
    %0 = arith.cmpi eq, %arg1, %c0_i32 : i32
    %1 = arith.extui %0 : i1 to i32
    %c0_i32_0 = arith.constant 0 : i32
    %2 = arith.cmpi ne, %1, %c0_i32_0 : i32
    scf.if %2 {
      %cst_40 = arith.constant 0.000000e+00 : bf16
      %45 = vector.broadcast %cst_40 : bf16 to vector<16x128xbf16>
      %c0_41 = arith.constant 0 : index
      %c0_42 = arith.constant 0 : index
      %46 = vector.load %arg10[%c0_41, %c0_42] : memref<32x128xbf16, #tpu.memory_space<vmem>>, vector<16x128xbf16>
      tpu.vector_store %arg10[%c0_41, %c0_42], %45 {strides = array<i32>} : memref<32x128xbf16, #tpu.memory_space<vmem>>, vector<16x128xbf16>,
      %cst_43 = arith.constant 0.000000e+00 : bf16
      %47 = vector.broadcast %cst_43 : bf16 to vector<16x128xbf16>
      %c0_44 = arith.constant 0 : index
      %c0_45 = arith.constant 0 : index
      %48 = vector.load %arg11[%c0_44, %c0_45] : memref<32x128xbf16, #tpu.memory_space<vmem>>, vector<16x128xbf16>
      tpu.vector_store %arg11[%c0_44, %c0_45], %47 {strides = array<i32>} : memref<32x128xbf16, #tpu.memory_space<vmem>>, vector<16x128xbf16>,
    } else {
    }
    %c0 = arith.constant 0 : index
    %c0_1 = arith.constant 0 : index
    %c0_2 = arith.constant 0 : index
    %3 = vector.load %arg2[%c0, %c0_1, %c0_2] : memref<1x16x128xf32, #tpu.memory_space<vmem>>, vector<1x16x128xf32>
    %4 = vector.shape_cast %3 : vector<1x16x128xf32> to vector<16x128xf32>
    %5 = arith.truncf %4 : vector<16x128xf32> to vector<16x128xbf16>
    %c16 = arith.constant 16 : index
    %c0_3 = arith.constant 0 : index
    %6 = vector.load %arg10[%c16, %c0_3] : memref<32x128xbf16, #tpu.memory_space<vmem>>, vector<16x128xbf16>
    tpu.vector_store %arg10[%c16, %c0_3], %5 {strides = array<i32>} : memref<32x128xbf16, #tpu.memory_space<vmem>>, vector<16x128xbf16>,
    %c14 = arith.constant 14 : index
    %c0_4 = arith.constant 0 : index
    %7 = vector.load %arg10[%c14, %c0_4] : memref<32x128xbf16, #tpu.memory_space<vmem>>, vector<16x128xbf16>
    %c16_5 = arith.constant 16 : index
    %c0_6 = arith.constant 0 : index
    %8 = vector.load %arg10[%c16_5, %c0_6] : memref<32x128xbf16, #tpu.memory_space<vmem>>, vector<16x128xbf16>
    %9 = tpu.concatenate %7, %8 in 1 : vector<16x128xbf16>, vector<16x128xbf16> -> vector<16x256xbf16>
    %c0_7 = arith.constant 0 : index
    %c0_8 = arith.constant 0 : index
    %10 = vector.load %arg3[%c0_7, %c0_8] : memref<256x128xbf16, #tpu.memory_space<vmem>>, vector<256x128xbf16>
    %cst = arith.constant dense<0.000000e+00> : vector<16x128xf32>
    %11 = tpu.matmul %9, %10, %cst {dimension_numbers = #tpu.dot_dimension_numbers<[1], [0], [0], [1], [0, 0, 1, 1], [], []>} : vector<16x256xbf16>, vector<256x128xbf16>, vector<16x128xf32> -> vector<16x128xf32>
    %c0_9 = arith.constant 0 : index
    %c0_10 = arith.constant 0 : index
    %12 = vector.load %arg4[%c0_9, %c0_10] : memref<1x128xf32, #tpu.memory_space<vmem>>, vector<1x128xf32>
    %13 = vector.broadcast %12 : vector<1x128xf32> to vector<16x128xf32>
    %14 = arith.addf %11, %13 : vector<16x128xf32>
    %cst_11 = arith.constant 0.000000e+00 : f32
    %15 = vector.broadcast %cst_11 : f32 to vector<16x128xf32>
    %16 = arith.maximumf %14, %15 : vector<16x128xf32>
    %17 = arith.truncf %16 : vector<16x128xf32> to vector<16x128xbf16>
    %c16_12 = arith.constant 16 : index
    %c0_13 = arith.constant 0 : index
    %18 = vector.load %arg11[%c16_12, %c0_13] : memref<32x128xbf16, #tpu.memory_space<vmem>>, vector<16x128xbf16>
    tpu.vector_store %arg11[%c16_12, %c0_13], %17 {strides = array<i32>} : memref<32x128xbf16, #tpu.memory_space<vmem>>, vector<16x128xbf16>,
    %c14_14 = arith.constant 14 : index
    %c0_15 = arith.constant 0 : index
    %19 = vector.load %arg11[%c14_14, %c0_15] : memref<32x128xbf16, #tpu.memory_space<vmem>>, vector<16x128xbf16>
    %c16_16 = arith.constant 16 : index
    %c0_17 = arith.constant 0 : index
    %20 = vector.load %arg11[%c16_16, %c0_17] : memref<32x128xbf16, #tpu.memory_space<vmem>>, vector<16x128xbf16>
    %21 = tpu.concatenate %19, %20 in 1 : vector<16x128xbf16>, vector<16x128xbf16> -> vector<16x256xbf16>
    %c0_18 = arith.constant 0 : index
    %c0_19 = arith.constant 0 : index
    %22 = vector.load %arg5[%c0_18, %c0_19] : memref<256x128xbf16, #tpu.memory_space<vmem>>, vector<256x128xbf16>
    %cst_20 = arith.constant dense<0.000000e+00> : vector<16x128xf32>
    %23 = tpu.matmul %21, %22, %cst_20 {dimension_numbers = #tpu.dot_dimension_numbers<[1], [0], [0], [1], [0, 0, 1, 1], [], []>} : vector<16x256xbf16>, vector<256x128xbf16>, vector<16x128xf32> -> vector<16x128xf32>
    %c0_21 = arith.constant 0 : index
    %c0_22 = arith.constant 0 : index
    %24 = vector.load %arg6[%c0_21, %c0_22] : memref<1x128xf32, #tpu.memory_space<vmem>>, vector<1x128xf32>
    %25 = vector.broadcast %24 : vector<1x128xf32> to vector<16x128xf32>
    %26 = arith.addf %23, %25 : vector<16x128xf32>
    %cst_23 = arith.constant 0.000000e+00 : f32
    %27 = vector.broadcast %cst_23 : f32 to vector<16x128xf32>
    %28 = arith.maximumf %26, %27 : vector<16x128xf32>
    %29 = arith.truncf %4 : vector<16x128xf32> to vector<16x128xbf16>
    %c0_24 = arith.constant 0 : index
    %c0_25 = arith.constant 0 : index
    %30 = vector.load %arg7[%c0_24, %c0_25] : memref<128x128xbf16, #tpu.memory_space<vmem>>, vector<128x128xbf16>
    %cst_26 = arith.constant dense<0.000000e+00> : vector<16x128xf32>
    %31 = tpu.matmul %29, %30, %cst_26 {dimension_numbers = #tpu.dot_dimension_numbers<[1], [0], [0], [1], [0, 0, 1, 1], [], []>} : vector<16x128xbf16>, vector<128x128xbf16>, vector<16x128xf32> -> vector<16x128xf32>
    %c0_27 = arith.constant 0 : index
    %c0_28 = arith.constant 0 : index
    %32 = vector.load %arg8[%c0_27, %c0_28] : memref<1x128xf32, #tpu.memory_space<vmem>>, vector<1x128xf32>
    %33 = vector.broadcast %32 : vector<1x128xf32> to vector<16x128xf32>
    %34 = arith.addf %31, %33 : vector<16x128xf32>
    %35 = arith.addf %28, %34 : vector<16x128xf32>
    %cst_29 = arith.constant 0.000000e+00 : f32
    %36 = vector.broadcast %cst_29 : f32 to vector<16x128xf32>
    %37 = arith.maximumf %35, %36 : vector<16x128xf32>
    %c0_30 = arith.constant 0 : index
    %c0_31 = arith.constant 0 : index
    %c0_32 = arith.constant 0 : index
    %38 = vector.load %arg9[%c0_30, %c0_31, %c0_32] : memref<1x16x128xf32, #tpu.memory_space<vmem>>, vector<1x16x128xf32>
    %39 = vector.shape_cast %38 : vector<1x16x128xf32> to vector<16x128xf32>
    %40 = vector.shape_cast %37 : vector<16x128xf32> to vector<1x16x128xf32>
    tpu.vector_store %arg9[%c0_30, %c0_31, %c0_32], %40 {strides = array<i32>} : memref<1x16x128xf32, #tpu.memory_space<vmem>>, vector<1x16x128xf32>,
    %c30 = arith.constant 30 : index
    %c0_33 = arith.constant 0 : index
    %41 = vector.load %arg10[%c30, %c0_33] : memref<32x128xbf16, #tpu.memory_space<vmem>>, vector<2x128xbf16>
    %c30_34 = arith.constant 30 : index
    %c0_35 = arith.constant 0 : index
    %42 = vector.load %arg11[%c30_34, %c0_35] : memref<32x128xbf16, #tpu.memory_space<vmem>>, vector<2x128xbf16>
    %c14_36 = arith.constant 14 : index
    %c0_37 = arith.constant 0 : index
    %43 = vector.load %arg10[%c14_36, %c0_37] : memref<32x128xbf16, #tpu.memory_space<vmem>>, vector<2x128xbf16>
    tpu.vector_store %arg10[%c14_36, %c0_37], %41 {strides = array<i32>} : memref<32x128xbf16, #tpu.memory_space<vmem>>, vector<2x128xbf16>,
    %c14_38 = arith.constant 14 : index
    %c0_39 = arith.constant 0 : index
    %44 = vector.load %arg11[%c14_38, %c0_39] : memref<32x128xbf16, #tpu.memory_space<vmem>>, vector<2x128xbf16>
    tpu.vector_store %arg11[%c14_38, %c0_39], %42 {strides = array<i32>} : memref<32x128xbf16, #tpu.memory_space<vmem>>, vector<2x128xbf16>,
    return
  }
  func.func @transform_0(%arg0: i32, %arg1: i32) -> (i32, i32, i32) {
    %c0_i32 = arith.constant 0 : i32
    %c0_i32_0 = arith.constant 0 : i32
    return %arg0, %arg1, %c0_i32 : i32, i32, i32
  }
  func.func @transform_1(%arg0: i32, %arg1: i32) -> (i32, i32) {
    %c0_i32 = arith.constant 0 : i32
    %c0_i32_0 = arith.constant 0 : i32
    %c0_i32_1 = arith.constant 0 : i32
    return %c0_i32, %c0_i32_0 : i32, i32
  }
  func.func @transform_2(%arg0: i32, %arg1: i32) -> (i32, i32) {
    %c0_i32 = arith.constant 0 : i32
    %c0_i32_0 = arith.constant 0 : i32
    %c0_i32_1 = arith.constant 0 : i32
    return %c0_i32, %c0_i32_0 : i32, i32
  }
  func.func @transform_3(%arg0: i32, %arg1: i32) -> (i32, i32) {
    %c0_i32 = arith.constant 0 : i32
    %c0_i32_0 = arith.constant 0 : i32
    %c0_i32_1 = arith.constant 0 : i32
    return %c0_i32, %c0_i32_0 : i32, i32
  }
  func.func @transform_4(%arg0: i32, %arg1: i32) -> (i32, i32) {
    %c0_i32 = arith.constant 0 : i32
    %c0_i32_0 = arith.constant 0 : i32
    %c0_i32_1 = arith.constant 0 : i32
    return %c0_i32, %c0_i32_0 : i32, i32
  }
  func.func @transform_5(%arg0: i32, %arg1: i32) -> (i32, i32) {
    %c0_i32 = arith.constant 0 : i32
    %c0_i32_0 = arith.constant 0 : i32
    %c0_i32_1 = arith.constant 0 : i32
    return %c0_i32, %c0_i32_0 : i32, i32
  }
  func.func @transform_6(%arg0: i32, %arg1: i32) -> (i32, i32) {
    %c0_i32 = arith.constant 0 : i32
    %c0_i32_0 = arith.constant 0 : i32
    %c0_i32_1 = arith.constant 0 : i32
    return %c0_i32, %c0_i32_0 : i32, i32
  }
  func.func @transform_7(%arg0: i32, %arg1: i32) -> (i32, i32, i32) {
    %c0_i32 = arith.constant 0 : i32
    %c0_i32_0 = arith.constant 0 : i32
    return %arg0, %arg1, %c0_i32 : i32, i32, i32
  }
}

</mosaic_0001>

<bundles_post_ra>
// kernel: tpu_custom_call.1
= control target key start
LH: loop header
LB: loop body
LE: loop exit
PB: predicated region body
PF: predicated region fallthrough
CT: control target
= control target key end

     0   :  { %s1837_s0 = inlined_call_operand.hbm [shape: f32[2,16,128], index: 0, kind: input, shape index: {}]   ;;  %s1838_s1 = inlined_call_operand.hbm [shape: bf16[256,128], index: 1, kind: input, shape index: {}]   ;;  %s1839_s2 = inlined_call_operand.vmem [shape: f32[1,128], index: 2, kind: input, shape index: {}]   ;;  %s1840_s3 = inlined_call_operand.hbm [shape: bf16[256,128], index: 3, kind: input, shape index: {}]   ;;  %s1841_s4 = inlined_call_operand.vmem [shape: f32[1,128], index: 4, kind: input, shape index: {}]   ;;  %s1842_s5 = inlined_call_operand.hbm [shape: bf16[128,128], index: 5, kind: input, shape index: {}]   ;;  %s1843_s6 = inlined_call_operand.vmem [shape: f32[1,128], index: 6, kind: input, shape index: {}]   ;;  %s1844_s7 = inlined_call_operand.hbm [shape: f32[2,16,128], index: 7, kind: output, shape index: {}]  }
   0x1   :  { %1849 = sst [smem:[#allocation17_spill]] %s1838_s1 }
   0x2   :  { %1850 = sst [smem:[#allocation18_spill]] %s1840_s3 }
   0x3   :  { %1851 = sst [smem:[#allocation19_spill]] %s1842_s5 }
   0x4   :  { %12 = vsyncpa [#allocation5], 0 }
   0x5   :  { %14 = vsyncpa [#allocation5 + $0x1], 0 }
   0x6   :  { %15 = vsyncpa [#allocation8], 0 }
   0x7   :  { %16 = vsyncpa [#allocation11], 0 }
   0x8   :  { %17 = vsyncpa [#allocation6], 0 }
   0x9   :  { %19 = vsyncpa [#allocation6 + $0x1], 0  ;;  %s1614_s24 = smov 0   ;;  %s1616_s25 = smov 0  }
   0xa   :  { %s1618_s26 = smov 0   ;;  %s1620_s27 = smov 0  }
   0xb   :  { %s1622_s28 = smov 0   ;;  %s1624_s29 = smov 0  }
   0xc LB: > { %s1049_s30 = sadd.s32 4294967295, %s1558_s29   ;;  %s1050_s8 = sadd.s32 4294967294, %s1558_s29   ;;  %s1558_s29 = sphi %s1624_s29, %s25_s29   ;;  %s1554_s28 = sphi %s1622_s28, %s1872_s28   ;;  %s1550_s27 = sphi %s1620_s27, %s1871_s27   ;;  %s1546_s26 = sphi %s1618_s26, %s1870_s26   ;;  %s1542_s25 = sphi %s1616_s25, %s1869_s25   ;;  %s1538_s24 = sphi %s1614_s24, %s1868_s24  }
   0xd   : > { %p59_p0 = scmp.ne.s32.totalorder %s1542_s25, %s1538_s24  ;;  %p1648_p1 = scmp.eq.s32.totalorder %s1049_s30, 0 }
   0xe   : > { %p1652_p2 = scmp.eq.s32.totalorder %s1049_s30, 1  ;;  %p217_p3 = scmp.eq.s32.totalorder %s1050_s8, 1 }
   0xf   : > { %s1852_s9 = scalar_select %p1648_p1, 1, 0 }
  0x10   : > { %p1658_p4 = por %p1648_p1, %p59_p0  ;;  %p1051_p5 = scmp.ge.s32.totalorder %s1558_s29, 1 }
  0x11   : > { %p1663_p6 = por %p217_p3, %p59_p0  ;;  %p224_p7 = scmp.lt.s32.totalorder %s1558_s29, 3 }
  0x12   : > { %s1854_s11 = scalar_select %p1658_p4, 1, 0 }
  0x13   : > { %s1855_s12 = scalar_select %p1663_p6, 1, 0 }
  0x14   : > { %p1668_p8 = pnand %p1051_p5, %p224_p7  ;;  %s1560_s14 = smov [#allocation7]  }
  0x15   : > { %s236_s15 = sshll.u32 %s1560_s14, 4  ;;  %s1561_s17 = smov [#allocation9]   ;;  %s237_s15 = int_to_ptr.vmem [resolvable:$true] %s236_s15 }
  0x16   : > { %s1856_s13 = scalar_select %p1668_p8, 1, 0 }
  0x17   : > { %p1232_p9 = pneg %p1668_p8  ;;  %s252_s18 = sshll.u32 %s1561_s17, 4  ;;  %s253_s18 = int_to_ptr.vmem [resolvable:$true] %s252_s18 }
  0x18   : > { %s1562_s19 = smov [#allocation10]   ;;  %s1375_s21 = scalar_lea.vmem %s237_s15, 2048 }
  0x19   : > { %p1677_p11 = pnand %p1232_p9, %p1648_p1  ;;  %s268_s20 = sshll.u32 %s1562_s19, 4  ;;  %s269_s20 = int_to_ptr.vmem [resolvable:$true] %s268_s20 }
  0x1a   : > { %p1376_p13 = scmp.ne.s32.totalorder %s237_s15, %s1375_s21  ;;  %p1383_p5 = scmp.lt.s32.totalorder %s237_s15, %s237_s15 }
  0x1b   : > { %p1366_p12 = pneg %p1677_p11  ;;  %p1384_p7 = scmp.lt.s32.totalorder %s1375_s21, %s1375_s21 }
  0x1d   : > { %p1378_p0 = pnand %p1376_p13, %p1366_p12  ;;  %p1385_p9 = por %p1384_p7, %p1383_p5 }
  0x1f   : > { %p1379_p3 = pneg %p1378_p0 }
  0x21   : > { %p1386_p10 = pnand %p1385_p9, %p1379_p3 }
  0x23   : > { %1389 = shalt.err (!%p1386_p10)
}
  0x24   : > { %s1563_s22 = smov 64   ;;  %s1564_s23 = smov 4  }
  0x25   : > { %s1858_s1 = sld [smem:[#allocation17_spill]]  ;;  %s1401_s14 = scalar_lea.vmem %s253_s18, 2048 }
  0x26   : > { %p1402_p6 = scmp.ne.s32.totalorder %s253_s18, %s1401_s14  ;;  %p1409_p1 = scmp.lt.s32.totalorder %s253_s18, %s253_s18 }
  0x27   : > { %p1410_p4 = scmp.lt.s32.totalorder %s1401_s14, %s1401_s14 }
  0x28   : > { %p1404_p13 = pnand %p1402_p6, %p1366_p12 }
  0x29   : > { %p1411_p5 = por %p1410_p4, %p1409_p1 }
  0x2a   : > { %p1405_p0 = pneg %p1404_p13 }
  0x2b   : > { %1235 = dma.hbm_to_vmem [thread:$0]  (!%p1677_p11), %s1858_s1, 2048, %s237_s15, [#allocation8], %s1563_s22, %s1563_s22, %s1564_s23  }
  0x2c   : > { %p1412_p3 = pnand %p1411_p5, %p1405_p0 }
  0x2e   : > { %1415 = shalt.err (!%p1412_p3)
}
  0x2f   : > { %s1859_s3 = sld [smem:[#allocation18_spill]]  ;;  %s1427_s15 = scalar_lea.vmem %s269_s20, 1024 }
  0x30   : > { %p1428_p10 = scmp.ne.s32.totalorder %s269_s20, %s1427_s15  ;;  %p1435_p9 = scmp.lt.s32.totalorder %s269_s20, %s269_s20 }
  0x31   : > { %p1436_p13 = scmp.lt.s32.totalorder %s1427_s15, %s1427_s15 }
  0x32   : > { %p1430_p7 = pnand %p1428_p10, %p1366_p12 }
  0x33   : > { %p1437_p8 = por %p1436_p13, %p1435_p9 }
  0x34   : > { %p1431_p6 = pneg %p1430_p7 }
  0x35   : > { %1238 = dma.hbm_to_vmem [thread:$0]  (!%p1677_p11), %s1859_s3, 2048, %s253_s18, [#allocation8], %s1563_s22, %s1563_s22, %s1564_s23  }
  0x36   : > { %p1438_p1 = pnand %p1437_p8, %p1431_p6 }
  0x38   : > { %1441 = shalt.err (!%p1438_p1)
}
  0x39   : > { %s1860_s5 = sld [smem:[#allocation19_spill]]  ;;  %s46_s18 = sadd.s32 1, %s1546_s26 }
  0x3a   : > { %s37_s8 = sadd.s32 1, %s1554_s28  ;;  %p53_p4 = scmp.ne.s32.totalorder %s1546_s26, %s1542_s25 }
  0x3b   : > { %p39_p8 = scmp.ge.s32.totalorder %s37_s8, 2  ;;  %p54_p12 = scmp.eq.s32.totalorder %s1558_s29, 0 }
  0x3c   : > { %p1714_p0 = por %p1652_p2, %p53_p4  ;;  %p1253_p5 = scmp.lt.s32.totalorder %s1558_s29, 2 }
  0x3d   : > { %s1874_s8 = smov (%p39_p8, %s37_s8), 0  ;;  %p55_p3 = por %p54_p12, %p53_p4 }
  0x3e   : > { %s285_s14 = sand.u32 1, %s1546_s26   ;;  %s41_s17 = ssub.s32 %s1554_s28, %s1874_s8 }
  0x3f   : > { %1241 = dma.hbm_to_vmem [thread:$0]  (!%p1677_p11), %s1860_s5, 1024, %s269_s20, [#allocation11], %s1563_s22, %s1563_s22, %s1564_s23  }
  0x40   : > { %p44_p10 = scmp.eq.s32.totalorder %s41_s17, 0  ;;  %s1056_s20 = sshll.u32 %s285_s14, 4 }
  0x41   : > { %s1125_s22 = sshll.u32 %s1554_s28, 8  ;;  %s289_s21 = scalar_lea.vmem [#allocation4], %s1056_s20 }
  0x42   : > { %s1726_s23 = scalar_select %p44_p10, %s1546_s26, %s46_s18  }
  0x43   : > { %s297_s10 = scalar_lea.hbm %s1837_s0, %s1125_s22  ;;  %s298_s30 = sshll.u32 %s289_s21, 4  ;;  %s299_s30 = int_to_ptr.vmem [resolvable:$true] %s298_s30 }
  0x44   : > { %p1733_p2 = pnand %p1253_p5, %p55_p3  ;;  %s286_s3 = scalar_lea.sflag [#allocation5], %s285_s14 }
  0x45   : > { %s1455_s17 = scalar_lea.vmem %s299_s30, 256  ;;  %s1565_s18 = smov [#allocation4]  }
  0x46   : > { %p1444_p11 = pneg %p1733_p2  ;;  %p1456_p7 = scmp.ne.s32.totalorder %s299_s30, %s1455_s17 }
  0x47   : > { %s1460_s5 = sshll.u32 %s1565_s18, 4  ;;  %s1461_s5 = int_to_ptr.vmem [resolvable:$false] %s1460_s5 }
  0x48   : > { %p1458_p6 = pnand %p1456_p7, %p1444_p11  ;;  %s1462_s22 = scalar_lea.vmem %s1461_s5, 512 }
  0x49   : > { %p1463_p13 = scmp.lt.s32.totalorder %s299_s30, %s1461_s5  ;;  %p1464_p1 = scmp.lt.s32.totalorder %s1462_s22, %s1455_s17 }
  0x4a   : > { %p1459_p9 = pneg %p1458_p6 }
  0x4b   : > { %p1465_p4 = por %p1464_p1, %p1463_p13 }
  0x4d   : > { %p1466_p8 = pnand %p1465_p4, %p1459_p9 }
  0x4f   : > { %1469 = shalt.err (!%p1466_p8)
}
  0x50   : > { %s1566_s20 = smov 128   ;;  %s1567_s19 = smov 8  }
  0x51   : > { %1245 = dma.hbm_to_vmem [thread:$0]  (!%p1733_p2), %s297_s10, 256, %s299_s30, %s286_s3, %s1566_s20, %s1566_s20, %s1567_s19  }
  0x52   : > { %p1863_p12 = scmp.ne.s32.totalorder %s1856_s13, 0 }
  0x53   : > { %s1744_s14 = sand.u32 (!%p1863_p12), 1, %s1542_s25   ;;  %p1864_p5 = scmp.ne.s32.totalorder (!%p1863_p12), %s1854_s11, 0 }
  0x54   : > { %310 = sbr.rel (%p1863_p12) target bundleno = 571 (0x23b), region = 48  ;;  %s1060_s5 = sshll.u32 (!%p1863_p12), %s1744_s14, 4 }
  0x55   : > { %s313_s15 = scalar_lea.sflag (!%p1863_p12), [#allocation5], %s1744_s14  ;;  %s1750_s21 = scalar_lea.vmem (!%p1863_p12), [#allocation4], %s1060_s5 }
  0x59   : > { %1521 = dma.done.wait (%p1864_p5), %s313_s15, 256  }
  0x5a   : > { %1523 = vsyncadd (%p1864_p5), %s313_s15, 4294967040  ;;  %p1865_p3 = scmp.ne.s32.totalorder %s1852_s9, 0 }
  0x5c   : > { %1525 = dma.done.wait (%p1865_p3), [#allocation8], 4096  }
  0x5d   : > { %1527 = vsyncadd (%p1865_p3), [#allocation8], 4294963200 }
  0x5e   : > { %1529 = dma.done.wait (%p1865_p3), [#allocation11], 1024  }
  0x5f   : > { %1531 = vsyncadd (%p1865_p3), [#allocation11], 4294966272  ;;  %v1568_v0 = vmov 0   ;;  %v1318_v1 = vld [vmem:[#allocation7 + $0x78] sm:$0xff]   ;;  %v1320_v3 = vld [vmem:[#allocation7 + $0x70] sm:$0xff]   ;;  %vm437_vm0 = vcmask 1044480  }
  0x60   : > { %367 = vst [vmem:[#allocation2 + $0x4] sm:$0xf] %v1568_v0  ;;  %369 = vst [vmem:[#allocation3 + $0x4] sm:$0xf] %v1568_v0  ;;  %v1319_v2 = vld [vmem:[#allocation7 + $0x38] sm:$0xff]   ;;  %1143 = vmatprep.subr.bf16.mxu0 %v1318_v1  ;;  %v1321_v4 = vld [vmem:[#allocation7 + $0x30] sm:$0xff]  }
  0x61   : > { %1144 = vmatpush3.bf16.msra.mxu0 %v1319_v2  ;;  %v1322_v5 = vld [vmem:[#allocation7 + $0x68] sm:$0xff]   ;;  %v1324_v7 = vld [vmem:[#allocation7 + $0x60] sm:$0xff]   ;;  %v1326_v9 = vld [vmem:[#allocation7 + $0x58] sm:$0xff]   ;;  %v1569_v33 = vmov 0.0   ;;  %vm1570_vm1 = vmmov 0   ;;  %s358_s30 = scalar_lea.vmem [#allocation12], %s1060_s5 }
  0x62   : > { %1145 = vmatprep.subr.bf16.mxu0 %v1320_v3  ;;  %v1323_v6 = vld [vmem:[#allocation7 + $0x28] sm:$0xff]   ;;  %v1325_v8 = vld [vmem:[#allocation7 + $0x20] sm:$0xff]   ;;  %v1327_v10 = vld [vmem:[#allocation7 + $0x18] sm:$0xff]   ;;  %s933_s17 = sshll.u32 %s358_s30, 4  ;;  %s1130_s18 = sshll.u32 %s1550_s27, 8  ;;  %s1784_s17 = int_to_ptr.vmem [resolvable:$true] %s933_s17 }
  0x63   : > { %v1328_v11 = vld [vmem:[#allocation7 + $0x50] sm:$0xff]   ;;  %v371_v13 = vld [vmem:[%s1750_s21 + $0x8] sm:$0xff]  ;;  %v1332_v20 = vld [vmem:[#allocation7 + $0x40] sm:$0xff]   ;;  %s1789_s19 = scalar_lea.hbm %s1844_s7, %s1130_s18  ;;  %s918_s5 = scalar_lea.sflag [#allocation6], %s1744_s14 }
  0x64   : > { %v370_v12 = vld [vmem:[%s1750_s21] sm:$0xff]  ;;  %v1337_v16 = vld [vmem:[#allocation9 + $0x78] sm:$0xff]   ;;  %v1330_v18 = vld [vmem:[#allocation7 + $0x48] sm:$0xff]   ;;  %s1470_s15 = scalar_lea.vmem %s1784_s17, 256  ;;  %s1571_s27 = smov [#allocation12]  }
  0x65   : > { %1146 = vmatpush3.bf16.msra.mxu0 %v1321_v4  ;;  %v1329_v14 = vld [vmem:[#allocation7 + $0x10] sm:$0xff]   ;;  %v1766_v15 = vpack.c.bf16 %v371_v13, %v370_v12  ;;  %v1338_v17 = vld [vmem:[#allocation9 + $0x38] sm:$0xff]   ;;  %1165 = vmatprep.subr.bf16.mxu1 %v1337_v16  ;;  %v1331_v19 = vld [vmem:[#allocation7 + $0x8] sm:$0xff]   ;;  %p1471_p10 = scmp.ne.s32.totalorder %s1784_s17, %s1470_s15  ;;  %s1474_s21 = sshll.u32 %s1571_s27, 4  ;;  %s1475_s21 = int_to_ptr.vmem [resolvable:$false] %s1474_s21 }
  0x66   : > { %1147 = vmatprep.subr.bf16.mxu0 %v1322_v5  ;;  %1166 = vmatpush3.bf16.msra.mxu1 %v1338_v17  ;;  %v1333_v25 = vld [vmem:[#allocation7] sm:$0xff]   ;;  %v1339_v31 = vld [vmem:[#allocation10 + $0x38] sm:$0xff]   ;;  %v1340_v34 = vld [vmem:[#allocation9 + $0x70] sm:$0xff]   ;;  %s1476_s1 = scalar_lea.vmem %s1475_s21, 512  ;;  %p1477_p7 = scmp.lt.s32.totalorder %s1784_s17, %s1475_s21 }
  0x67   : > { %1141 = vst [vmem:[#allocation2 + $0x8] sm:$0xff] %v1766_v15   ;;  %v382_v21 = vld [vmem:[#allocation2 + $0x4] sm:$0x8]  ;;  %v1341_v35 = vld [vmem:[#allocation9 + $0x30] sm:$0xff]   ;;  %1167 = vmatprep.subr.bf16.mxu1 %v1340_v34  ;;  %v1343_v37 = vld [vmem:[#allocation9 + $0x68] sm:$0xff]   ;;  %p1472_p2 = pnand %p1471_p10, %p1714_p0  ;;  %p1478_p6 = scmp.lt.s32.totalorder %s1476_s1, %s1470_s15 }
  0x68   : > { %v1342_v36 = vld [vmem:[#allocation10 + $0x30] sm:$0xff]   ;;  %v1344_v38 = vld [vmem:[#allocation9 + $0x28] sm:$0xff]   ;;  %v1346_v40 = vld [vmem:[#allocation9 + $0x60] sm:$0xff]  }
  0x69   : > { %1148 = vmatpush3.bf16.msra.mxu0 %v1323_v6  ;;  %v1345_v39 = vld [vmem:[#allocation10 + $0x28] sm:$0xff]   ;;  %v1347_v41 = vld [vmem:[#allocation9 + $0x20] sm:$0xff]   ;;  %v1349_v43 = vld [vmem:[#allocation9 + $0x58] sm:$0xff]   ;;  %p1473_p11 = pneg %p1472_p2  ;;  %p1479_p9 = por %p1478_p6, %p1477_p7 }
  0x6a   : > { %1149 = vmatprep.subr.bf16.mxu0 %v1324_v7  ;;  %1168 = vmatpush3.bf16.msra.mxu1 %v1341_v35  ;;  %v1348_v42 = vld [vmem:[#allocation10 + $0x20] sm:$0xff]   ;;  %v1350_v44 = vld [vmem:[#allocation9 + $0x18] sm:$0xff]   ;;  %v1352_v46 = vld [vmem:[#allocation9 + $0x50] sm:$0xff]  }
  0x6b   : > { %1169 = vmatprep.subr.bf16.mxu1 %v1343_v37  ;;  %v1351_v45 = vld [vmem:[#allocation10 + $0x18] sm:$0xff]   ;;  %v1353_v47 = vld [vmem:[#allocation9 + $0x10] sm:$0xff]   ;;  %v1355_v49 = vld [vmem:[#allocation9 + $0x48] sm:$0xff]   ;;  %p1480_p13 = pnand %p1479_p9, %p1473_p11 }
  0x6c   : > { %v1354_v48 = vld [vmem:[#allocation10 + $0x10] sm:$0xff]   ;;  %v1356_v50 = vld [vmem:[#allocation9 + $0x8] sm:$0xff]   ;;  %v1358_v52 = vld [vmem:[#allocation9 + $0x40] sm:$0xff]  }
  0x6d   : > { %1150 = vmatpush3.bf16.msra.mxu0 %v1325_v8  ;;  %v1357_v51 = vld [vmem:[#allocation10 + $0x8] sm:$0xff]   ;;  %v1359_v53 = vld [vmem:[#allocation9] sm:$0xff]   ;;  %v594_v3 = vld [vmem:[#allocation3 + $0x4] sm:$0x8] }
  0x6e   : > { %1151 = vmatprep.subr.bf16.mxu0 %v1326_v9  ;;  %v383_v22 = vld [vmem:[#allocation2 + $0x8] sm:$0xf]  ;;  %v385_v23 = vld [vmem:[#allocation2 + $0xc] sm:$0xf]  ;;  %1170 = vmatpush3.bf16.msra.mxu1 %v1344_v38  ;;  %v1362_v54 = vld [vmem:[#allocation10] sm:$0xff]  }
  0x6f   : > { %v913_v24 = vld [vmem:[#allocation2 + $0xc] sm:$0x8]  ;;  %v1067_v26 = vcombine.low %v382_v21, %v383_v22  ;;  %v1069_v27 = vcombine.low %v383_v22, %v385_v23  ;;  %v1336_v28 = vld [vmem:[#allocation2 + $0xc] ss:$0 sps:$4 sm:$0x77]   ;;  %1171 = vmatprep.subr.bf16.mxu1 %v1346_v40 }
  0x70   : > { %915 = vst [vmem:[#allocation2 + $0x4] sm:$0x8] %v913_v24  ;;  %v439_v30 = vrot.slane %v1336_v28, 3  ;;  %v1070_v58 = vld [vmem:[%s1839_s2] ss:$0 sm:$0xff] }
  0x71   : > { %1152 = vmatpush3.bf16.msra.mxu0 %v1327_v10  ;;  %v438_v29 = vrot.slane %v1067_v26, 3  ;;  %573 = vmatprep.mubr.bf16.mxu0 %v1069_v27 }
  0x72   : > { %1153 = vmatprep.subr.bf16.mxu0 %v1328_v11  ;;  %1172 = vmatpush3.bf16.msra.mxu1 %v1347_v41 }
  0x73   : > { %v440_v32 = vsel %vm437_vm0, %v438_v29, %v439_v30  ;;  %1173 = vmatprep.subr.bf16.mxu1 %v1349_v43 }
  0x75   : > { %1154 = vmatpush3.bf16.msra.mxu0 %v1329_v14 }
  0x76   : > { %1155 = vmatprep.subr.bf16.mxu0 %v1330_v18  ;;  %1174 = vmatpush3.bf16.msra.mxu1 %v1350_v44  ;;  %v1111_v18 = vld [vmem:[%s1843_s6] ss:$0 sm:$0xff] }
  0x77   : > { %1175 = vmatprep.subr.bf16.mxu1 %v1352_v46 }
  0x79   : > { %1156 = vmatpush3.bf16.msra.mxu0 %v1331_v19  ;;  %v1093_v19 = vld [vmem:[%s1841_s4] ss:$0 sm:$0xff] }
  0x7a   : > { %1157 = vmatprep.subr.bf16.mxu0 %v1332_v20  ;;  %1176 = vmatpush3.bf16.msra.mxu1 %v1353_v47 }
  0x7b   : > { %1177 = vmatprep.subr.bf16.mxu1 %v1355_v49 }
  0x7d   : > { %1158 = vmatpush3.bf16.msra.mxu0 %v1333_v25 }
  0x7e   : > { %1196 = vmatprep.subr.bf16.mxu0 %v1569_v33  ;;  %1178 = vmatpush3.bf16.msra.mxu1 %v1356_v50 }
  0x7f   : > { %1179 = vmatprep.subr.bf16.mxu1 %v1358_v52 }
  0x80   : > { %574 = vmatmul.mubr.bf16.vlgmr.msra.gmra.mxu0 %v440_v32 }
  0x81   : > { %1197 = vmatpush3.bf16.msra.mxu0 %v1339_v31  ;;  %1212 = vmatprep.mubr.msk.bf16.mxu0 %vm1570_vm1, %v1569_v33 }
  0x82   : > { %1198 = vmatprep.subr.bf16.mxu0 %v1569_v33  ;;  %1180 = vmatpush3.bf16.msra.mxu1 %v1359_v53 }
  0x85   : > { %1199 = vmatpush3.bf16.msra.mxu0 %v1342_v36 }
  0x86   : > { %1200 = vmatprep.subr.bf16.mxu0 %v1569_v33 }
  0x89   : > { %1201 = vmatpush3.bf16.msra.mxu0 %v1345_v39 }
  0x8a   : > { %1202 = vmatprep.subr.bf16.mxu0 %v1569_v33 }
  0x8d   : > { %1203 = vmatpush3.bf16.msra.mxu0 %v1348_v42 }
  0x8e   : > { %1204 = vmatprep.subr.bf16.mxu0 %v1569_v33 }
  0x91   : > { %1205 = vmatpush3.bf16.msra.mxu0 %v1351_v45 }
  0x92   : > { %1206 = vmatprep.subr.bf16.mxu0 %v1569_v33 }
  0x95   : > { %1207 = vmatpush3.bf16.msra.mxu0 %v1354_v48 }
  0x96   : > { %1208 = vmatprep.subr.bf16.mxu0 %v1569_v33 }
  0x99   : > { %1209 = vmatpush3.bf16.msra.mxu0 %v1357_v51 }
  0x9a   : > { %1210 = vmatprep.subr.bf16.mxu0 %v1569_v33 }
  0x9d   : > { %1211 = vmatpush3.bf16.msra.mxu0 %v1362_v54 }
  0xa0   : > { %1213 = vmatmul.mubr.bf16.vlgmr.msra.gmra.mxu0 %v1766_v15 }
 0x140   : > { %v1159_v55 = vpop.f32.mrf.mxu0 }
 0x142   : > { %v1160_v56 = vpop.f32.mrf.mxu0 }
 0x143   : > { %v1161_v57 = vadd.f32 %v1160_v56, %v1159_v55 }
 0x144   : > { %v1162_v59 = vpop.f32.mrf.mxu0 }
 0x145   : > { %v576_v61 = vadd.f32 %v1161_v57, %v1070_v58 }
 0x146   : > { %v1163_v60 = vpop.f32.mrf.mxu0 }
 0x147   : > { %v1164_v62 = vadd.f32 %v1163_v60, %v1162_v59  ;;  %v582_v0 = vmax.f32 %v576_v61, 0.0 }
 0x149   : > { %v579_v63 = vadd.f32 %v1164_v62, %v1070_v58 }
 0x14b   : > { %v583_v1 = vmax.f32 %v579_v63, 0.0 }
 0x14d   : > { %v1139_v2 = vpack.c.bf16 %v583_v1, %v582_v0 }
 0x14f   : > { %1142 = vst [vmem:[#allocation3 + $0x8] sm:$0xff] %v1139_v2  }
 0x156   : > { %v595_v4 = vld [vmem:[#allocation3 + $0x8] sm:$0xf]  ;;  %v597_v5 = vld [vmem:[#allocation3 + $0xc] sm:$0xf] }
 0x157   : > { %v914_v6 = vld [vmem:[#allocation3 + $0xc] sm:$0x8]  ;;  %v1090_v7 = vcombine.low %v594_v3, %v595_v4  ;;  %v1092_v8 = vcombine.low %v595_v4, %v597_v5  ;;  %v1363_v9 = vld [vmem:[#allocation3 + $0xc] ss:$0 sps:$4 sm:$0x77]  }
 0x158   : > { %916 = vst [vmem:[#allocation3 + $0x4] sm:$0x8] %v914_v6  ;;  %v650_v11 = vrot.slane %v1363_v9, 3 }
 0x159   : > { %v649_v10 = vrot.slane %v1090_v7, 3  ;;  %784 = vmatprep.mubr.bf16.mxu1 %v1092_v8 }
 0x15b   : > { %v651_v12 = vsel %vm437_vm0, %v649_v10, %v650_v11 }
 0x15c   : > { %785 = vmatmul.mubr.bf16.vlgmr.msra.gmra.mxu1 %v651_v12 }
 0x160   : > { %v900_v13 = vpop.f32.mrf.mxu0 }
 0x161   : > { %v901_v23 = vadd.f32 %v1111_v18, %v900_v13 }
 0x162   : > { %v1214_v14 = vpop.f32.mrf.mxu0 }
 0x164   : > { %v903_v15 = vpop.f32.mrf.mxu0 }
 0x165   : > { %v904_v31 = vadd.f32 %v1111_v18, %v903_v15 }
 0x166   : > { %v1215_v16 = vpop.f32.mrf.mxu0 }
 0x21c   : > { %v1181_v17 = vpop.f32.mrf.mxu1 }
 0x21e   : > { %v1182_v20 = vpop.f32.mrf.mxu1 }
 0x21f   : > { %v1183_v21 = vadd.f32 %v1182_v20, %v1181_v17 }
 0x220   : > { %v1184_v22 = vpop.f32.mrf.mxu1 }
 0x221   : > { %v787_v24 = vadd.f32 %v1183_v21, %v1093_v19 }
 0x222   : > { %v1185_v25 = vpop.f32.mrf.mxu1 }
 0x223   : > { %v793_v26 = vmax.f32 %v787_v24, 0.0  ;;  %v1186_v27 = vadd.f32 %v1185_v25, %v1184_v22 }
 0x225   : > { %v907_v28 = vadd.f32 %v901_v23, %v793_v26  ;;  %v790_v29 = vadd.f32 %v1186_v27, %v1093_v19 }
 0x227   : > { %v909_v30 = vmax.f32 %v907_v28, 0.0  ;;  %v794_v32 = vmax.f32 %v790_v29, 0.0 }
 0x229   : > { %911 = vst [vmem:[%s358_s30] sm:$0xff] %v909_v30  ;;  %v908_v33 = vadd.f32 %v904_v31, %v794_v32 }
 0x22b   : > { %v910_v34 = vmax.f32 %v908_v33, 0.0 }
 0x22d   : > { %912 = vst [vmem:[%s358_s30 + $0x8] sm:$0xff] %v910_v34 }
 0x22e   : > { %1483 = shalt.err (!%p1480_p13)
}
 0x22f   : > { %s1484_s3 = scalar_lea.hbm %s1789_s19, 256  ;;  %s1488_s13 = scalar_lea.hbm %s1844_s7, 512 }
 0x230   : > { %p1485_p1 = scmp.ne.s32.totalorder %s1789_s19, %s1484_s3  ;;  %p1489_p12 = scmp.lt.s32.totalorder %s1789_s19, %s1844_s7 }
 0x231   : > { %p1490_p5 = scmp.lt.s32.totalorder %s1488_s13, %s1484_s3 }
 0x232   : > { %p1486_p4 = pnand %p1485_p1, %p1714_p0 }
 0x233   : > { %p1491_p3 = por %p1490_p5, %p1489_p12 }
 0x234   : > { %p1487_p8 = pneg %p1486_p4 }
 0x236   : > { %p1492_p10 = pnand %p1491_p3, %p1487_p8 }
 0x238   : > { %1495 = shalt.err (!%p1492_p10)
}
 0x239   : > { %s1572_s18 = smov 128   ;;  %s1573_s22 = smov 8  }
 0x23a   : > { %1230 = dma.vmem_to_hbm [thread:$0]  (%p1714_p0), %s1784_s17, 256, %s1789_s19, %s918_s5, %s1572_s18, %s1572_s18, %s1573_s22  }
 0x23b PF: > { %s948_s20 = sand.u32 1, %s1538_s24   ;;  %p1866_p2 = scmp.ne.s32.totalorder %s1855_s12, 0 }
 0x23c   : > { %p1867_p11 = scmp.ge.s32.totalorder %s1558_s29, 2  ;;  %s949_s15 = scalar_lea.sflag [#allocation6], %s948_s20 }
 0x23e   : > { %p1247_p7 = pnand %p1867_p11, %p1866_p2 }
 0x240   : > { %p1248_p6 = pneg %p1247_p7 }
 0x242   : > { %1533 = dma.done.wait (%p1248_p6), %s949_s15, 256  }
 0x243   : > { %1535 = vsyncadd (%p1248_p6), %s949_s15, 4294967040  ;;  %s25_s29 = sadd.s32 1, %s1558_s29   ;;  %s1868_s24 = smov %s1542_s25 }
 0x244   : > { %p22_p9 = scmp.ge.s32.totalorder %s25_s29, 4   ;;  %s1869_s25 = smov %s1546_s26 }
 0x245   : > { %s1870_s26 = smov %s1726_s23  ;;  %s1871_s27 = smov %s1554_s28 }
 0x246   : > { %s1872_s28 = smov %s1874_s8  ;;  %24 = sbr.rel (!%p22_p9) target bundleno = 12 (0xc), region = 109 }
 0x24b   :  { %954 = vsyncpa [#allocation5], 1 }
 0x24c   :  { %956 = vsyncpa [#allocation5 + $0x1], 1 }
 0x24d   :  { %957 = vsyncpa [#allocation8], 1 }
 0x24e   :  { %958 = vsyncpa [#allocation11], 1 }
 0x24f   :  { %959 = vsyncpa [#allocation6], 1 }
 0x250   :  { %961 = vsyncpa [#allocation6 + $0x1], 1 }

</bundles_post_ra>
